<compile_context>
chip_gen: v5e
topology: v5e:2x2
jax: 0.10.0
libtpu: 0.0.40
codegen_flags: <defaults>
</compile_context>

<pallas_src>
import functools

import jax
import jax.numpy as jnp
from jax import lax
from jax.experimental import pallas as pl
from jax.experimental.pallas import tpu as pltpu


def _dilate2d_kernel(x_ref, o_ref, *, kernelsize, stride, h_pad, w_pad, h_out, w_out):
    # x_ref: (h_pad, w_pad, nc_blk)  -- N*C mapped to the lane axis.
    # o_ref: (h_out, w_out, nc_blk)
    x = x_ref[...]
    if x.dtype != jnp.float32:
        x = x.astype(jnp.float32)
    nc_blk = x.shape[-1]

    # Pass 1: sum k taps along W (sublane axis), strided output columns.
    w_end = (w_out - 1) * stride + 1
    rows = lax.slice(x, (0, 0, 0), (h_pad, w_end, nc_blk), (1, stride, 1))
    for j in range(1, kernelsize):
        rows = rows + lax.slice(
            x, (0, j, 0), (h_pad, j + w_end, nc_blk), (1, stride, 1)
        )

    # Pass 2: sum k taps along H (leading axis), strided output rows.
    h_end = (h_out - 1) * stride + 1
    acc = lax.slice(rows, (0, 0, 0), (h_end, w_out, nc_blk), (stride, 1, 1))
    for i in range(1, kernelsize):
        acc = acc + lax.slice(
            rows, (i, 0, 0), (i + h_end, w_out, nc_blk), (stride, 1, 1)
        )

    # Normalize by k^2 (ones kernel / sum) then clamp(max=1.0).
    acc = acc * (1.0 / float(kernelsize * kernelsize))
    acc = jnp.minimum(acc, 1.0)
    o_ref[...] = acc.astype(o_ref.dtype)


def dilate2d(x, nchannels, kernelsize, stride=1, padding=0):
    """Pallas equivalent of Dilate2d.forward. x: (N, C, H, W)."""
    n, c, h, w = x.shape
    assert c == nchannels
    assert kernelsize >= 1 and stride >= 1

    # Zero padding (conv2d padding semantics) in plain JAX glue.
    xp = jnp.pad(x, ((0, 0), (0, 0), (padding, padding), (padding, padding)))
    h_pad, w_pad = h + 2 * padding, w + 2 * padding
    h_out = (h_pad - kernelsize) // stride + 1
    w_out = (w_pad - kernelsize) // stride + 1
    assert h_out > 0 and w_out > 0, "kernel larger than padded input"

    # Layout plumbing: (N, C, H_pad, W_pad) -> (H_pad, W_pad, N*C).
    nc = n * c
    xt = jnp.transpose(xp, (2, 3, 0, 1)).reshape(h_pad, w_pad, nc)

    # Lane-axis tiling: chunk N*C by 128 when large (lane-dense blocks, >=2
    # grid points so v7x's dual TensorCores can split the "parallel" axis);
    # otherwise a single full-extent block (no padded HBM traffic).
    lane_chunk = 128
    if nc > lane_chunk:
        nc_blk = lane_chunk
        nc_pad = pl.cdiv(nc, lane_chunk) * lane_chunk
        if nc_pad != nc:
            xt = jnp.pad(xt, ((0, 0), (0, 0), (0, nc_pad - nc)))
    else:
        nc_blk = nc
        nc_pad = nc
    num_lane_blocks = nc_pad // nc_blk

    # VMEM budget: input block + row-sum intermediate + output block (all f32),
    # double-buffered by the pipeline, plus headroom. Clamp under v7x 64 MiB.
    block_bytes = (h_pad * w_pad + h_pad * w_out + h_out * w_out) * nc_blk * 4
    vmem_limit = int(min(max(4 * block_bytes + (1 << 20), 16 << 20), 32 << 20))

    kernel = functools.partial(
        _dilate2d_kernel,
        kernelsize=kernelsize,
        stride=stride,
        h_pad=h_pad,
        w_pad=w_pad,
        h_out=h_out,
        w_out=w_out,
    )

    # TODO(synk): for very large H*W planes (block > VMEM budget), tile H with
    # a (kernelsize-1)-row halo via manual DMA instead of full-plane blocks.
    out_t = pl.pallas_call(
        kernel,
        out_shape=jax.ShapeDtypeStruct((h_out, w_out, nc_pad), x.dtype),
        grid=(num_lane_blocks,),
        in_specs=[pl.BlockSpec((h_pad, w_pad, nc_blk), lambda l: (0, 0, l))],
        out_specs=pl.BlockSpec((h_out, w_out, nc_blk), lambda l: (0, 0, l)),
        compiler_params=pltpu.CompilerParams(
            dimension_semantics=("parallel",),
            vmem_limit_bytes=vmem_limit,
        ),
    )(xt)

    # Back to NCHW.
    out_t = out_t[:, :, :nc]
    return jnp.transpose(out_t.reshape(h_out, w_out, n, c), (2, 3, 0, 1))


def _reference(x, kernelsize, stride, padding):
    # Pure-JAX reference of the same math (k^2 shifted taps, scale, clamp).
    xp = jnp.pad(x, ((0, 0), (0, 0), (padding, padding), (padding, padding)))
    n, c, hp, wp = xp.shape
    h_out = (hp - kernelsize) // stride + 1
    w_out = (wp - kernelsize) // stride + 1
    acc = jnp.zeros((n, c, h_out, w_out), jnp.float32)
    for i in range(kernelsize):
        for j in range(kernelsize):
            acc = acc + lax.slice(
                xp,
                (0, 0, i, j),
                (n, c, i + (h_out - 1) * stride + 1, j + (w_out - 1) * stride + 1),
                (1, 1, stride, stride),
            )
    return jnp.minimum(acc / (kernelsize * kernelsize), 1.0).astype(x.dtype)


if __name__ == "__main__":
    nchannels = 4
    kernelsize = 3
    stride = 1
    padding = 1

    key = jax.random.PRNGKey(0)
    x = jax.random.uniform(key, (2, nchannels, 16, 16), dtype=jnp.float32) * 2.0

    out = dilate2d(x, nchannels, kernelsize, stride=stride, padding=padding)
    out = jax.block_until_ready(out)

    ref = _reference(x, kernelsize, stride, padding)
    assert out.shape == ref.shape, (out.shape, ref.shape)
    assert jnp.allclose(out, ref, atol=1e-5, rtol=1e-5), "mismatch vs reference"

    # Exercise the strided / unchunked-lane path too (stride=2, no padding).
    out2 = dilate2d(x, nchannels, kernelsize, stride=2, padding=0)
    out2 = jax.block_until_ready(out2)
    ref2 = _reference(x, kernelsize, 2, 0)
    assert out2.shape == ref2.shape, (out2.shape, ref2.shape)
    assert jnp.allclose(out2, ref2, atol=1e-5, rtol=1e-5), "mismatch (stride=2)"

    print("KERNEL_OK")
</pallas_src>

<mosaic_0001>
module attributes {stable_mosaic.version = 11 : i64} {
  func.func @_dilate2d_kernel(%arg0: i32, %arg1: memref<18x18x8xf32, #tpu.memory_space<vmem>>, %arg2: memref<16x16x8xf32, #tpu.memory_space<vmem>>) attributes {dimension_semantics = [#tpu.dimension_semantics<parallel>], iteration_bounds = array<i64: 1>, scalar_prefetch = 0 : i64, scratch_operands = 0 : i64, tpu.core_type = #tpu.core_type<tc>, window_params = [{transform_indices = @transform_0, window_bounds = array<i64: 18, 18, 8>}, {transform_indices = @transform_1, window_bounds = array<i64: 16, 16, 8>}]} {
    %c0 = arith.constant 0 : index
    %c0_0 = arith.constant 0 : index
    %c0_1 = arith.constant 0 : index
    %0 = vector.load %arg1[%c0, %c0_0, %c0_1] : memref<18x18x8xf32, #tpu.memory_space<vmem>>, vector<18x18x8xf32>
    %1 = vector.extract_strided_slice %0 {offsets = [0, 0, 0], sizes = [18, 16, 8], strides = [1, 1, 1]} : vector<18x18x8xf32> to vector<18x16x8xf32>
    %2 = vector.extract_strided_slice %0 {offsets = [0, 1, 0], sizes = [18, 16, 8], strides = [1, 1, 1]} : vector<18x18x8xf32> to vector<18x16x8xf32>
    %3 = arith.addf %1, %2 : vector<18x16x8xf32>
    %4 = vector.extract_strided_slice %0 {offsets = [0, 2, 0], sizes = [18, 16, 8], strides = [1, 1, 1]} : vector<18x18x8xf32> to vector<18x16x8xf32>
    %5 = arith.addf %3, %4 : vector<18x16x8xf32>
    %6 = vector.extract_strided_slice %5 {offsets = [0, 0, 0], sizes = [16, 16, 8], strides = [1, 1, 1]} : vector<18x16x8xf32> to vector<16x16x8xf32>
    %7 = vector.extract_strided_slice %5 {offsets = [1, 0, 0], sizes = [16, 16, 8], strides = [1, 1, 1]} : vector<18x16x8xf32> to vector<16x16x8xf32>
    %8 = arith.addf %6, %7 : vector<16x16x8xf32>
    %9 = vector.extract_strided_slice %5 {offsets = [2, 0, 0], sizes = [16, 16, 8], strides = [1, 1, 1]} : vector<18x16x8xf32> to vector<16x16x8xf32>
    %10 = arith.addf %8, %9 : vector<16x16x8xf32>
    %cst = arith.constant 0.111111112 : f32
    %11 = vector.broadcast %cst : f32 to vector<16x16x8xf32>
    %12 = arith.mulf %10, %11 : vector<16x16x8xf32>
    %cst_2 = arith.constant 1.000000e+00 : f32
    %13 = vector.broadcast %cst_2 : f32 to vector<16x16x8xf32>
    %14 = arith.minimumf %12, %13 : vector<16x16x8xf32>
    %c0_3 = arith.constant 0 : index
    %c0_4 = arith.constant 0 : index
    %c0_5 = arith.constant 0 : index
    %15 = vector.load %arg2[%c0_3, %c0_4, %c0_5] : memref<16x16x8xf32, #tpu.memory_space<vmem>>, vector<16x16x8xf32>
    tpu.vector_store %arg2[%c0_3, %c0_4, %c0_5], %14 {strides = array<i32>} : memref<16x16x8xf32, #tpu.memory_space<vmem>>, vector<16x16x8xf32>,
    return
  }
  func.func @transform_0(%arg0: i32) -> (i32, i32, i32) {
    %c0_i32 = arith.constant 0 : i32
    %c0_i32_0 = arith.constant 0 : i32
    %c0_i32_1 = arith.constant 0 : i32
    return %c0_i32, %c0_i32_0, %arg0 : i32, i32, i32
  }
  func.func @transform_1(%arg0: i32) -> (i32, i32, i32) {
    %c0_i32 = arith.constant 0 : i32
    %c0_i32_0 = arith.constant 0 : i32
    %c0_i32_1 = arith.constant 0 : i32
    return %c0_i32, %c0_i32_0, %arg0 : i32, i32, i32
  }
}

</mosaic_0001>

<bundles_post_ra>
// kernel: tpu_custom_call.1
= control target key start
LH: loop header
LB: loop body
LE: loop exit
PB: predicated region body
PF: predicated region fallthrough
CT: control target
= control target key end

     0   :  { %vm116_vm0 = vcmask 1046528   ;;  %vm279_vm1 = vcmask 1045504   ;;  %vm570_vm2 = vcmask 64512   ;;  %s979_s0 = inlined_call_operand.vmem [shape: f32[18,18,8], index: 0, kind: input, shape index: {}]   ;;  %s980_s1 = inlined_call_operand.vmem [shape: f32[16,16,8], index: 1, kind: output, shape index: {}]  }
   0x1   :  { %v8_v0 = vld [vmem:[%s979_s0] sm:$0xff]  ;;  %v9_v1 = vld [vmem:[%s979_s0 + $0x8] sm:$0xff]  ;;  %v11_v2 = vld [vmem:[%s979_s0 + $0x18] sm:$0xff] }
   0x2   :  { %v12_v3 = vld [vmem:[%s979_s0 + $0x20] sm:$0xff]  ;;  %v14_v4 = vld [vmem:[%s979_s0 + $0x30] sm:$0xff]  ;;  %v15_v5 = vld [vmem:[%s979_s0 + $0x38] sm:$0xff]  ;;  %v117_v6 = vrot.slane %v8_v0, 1  ;;  %v118_v7 = vrot.slane %v9_v1, 1  ;;  %v122_v8 = vrot.slane %v11_v2, 1 }
   0x3   :  { %v123_v9 = vrot.slane %v12_v3, 1  ;;  %v127_v10 = vrot.slane %v14_v4, 1  ;;  %v128_v11 = vrot.slane %v15_v5, 1  ;;  %v280_v12 = vrot.slane %v8_v0, 2  ;;  %v10_v13 = vld [vmem:[%s979_s0 + $0x10] sm:$0x3] }
   0x4   :  { %v119_v14 = vsel %vm116_vm0, %v117_v6, %v118_v7  ;;  %v281_v15 = vrot.slane %v9_v1, 2  ;;  %v285_v16 = vrot.slane %v11_v2, 2  ;;  %v286_v17 = vrot.slane %v12_v3, 2  ;;  %v13_v18 = vld [vmem:[%s979_s0 + $0x28] sm:$0x3]  ;;  %v18_v45 = vld [vmem:[%s979_s0 + $0x50] sm:$0xff] }
   0x5   :  { %v124_v19 = vsel %vm116_vm0, %v122_v8, %v123_v9  ;;  %v129_v20 = vsel %vm116_vm0, %v127_v10, %v128_v11  ;;  %v243_v21 = vadd.f32 %v119_v14, %v8_v0  ;;  %v290_v22 = vrot.slane %v14_v4, 2  ;;  %v16_v23 = vld [vmem:[%s979_s0 + $0x40] sm:$0x3]  ;;  %v17_v40 = vld [vmem:[%s979_s0 + $0x48] sm:$0xff]  ;;  %v19_v50 = vld [vmem:[%s979_s0 + $0x58] sm:$0x3] }
   0x6   :  { %v245_v24 = vadd.f32 %v124_v19, %v11_v2  ;;  %v247_v25 = vadd.f32 %v129_v20, %v14_v4  ;;  %v282_v26 = vsel %vm279_vm1, %v280_v12, %v281_v15  ;;  %v287_v27 = vsel %vm279_vm1, %v285_v16, %v286_v17  ;;  %v20_v63 = vld [vmem:[%s979_s0 + $0x60] sm:$0xff]  ;;  %v21_v4 = vld [vmem:[%s979_s0 + $0x68] sm:$0xff] }
   0x7   :  { %v291_v28 = vrot.slane %v15_v5, 2  ;;  %v406_v29 = vadd.f32 %v282_v26, %v243_v21  ;;  %v120_v30 = vrot.slane %v10_v13, 1  ;;  %v125_v31 = vrot.slane %v13_v18, 1  ;;  %v23_v26 = vld [vmem:[%s979_s0 + $0x78] sm:$0xff] }
   0x8   :  { %v408_v32 = vadd.f32 %v287_v27, %v245_v24  ;;  %v130_v33 = vrot.slane %v16_v23, 1  ;;  %v283_v34 = vrot.slane %v10_v13, 2  ;;  %v288_v35 = vrot.slane %v13_v18, 2  ;;  %v24_v27 = vld [vmem:[%s979_s0 + $0x80] sm:$0xff] }
   0x9   :  { %v292_v36 = vsel %vm279_vm1, %v290_v22, %v291_v28  ;;  %v121_v37 = vsel %vm116_vm0, %v118_v7, %v120_v30  ;;  %v126_v38 = vsel %vm116_vm0, %v123_v9, %v125_v31  ;;  %v293_v39 = vrot.slane %v16_v23, 2  ;;  %v22_v9 = vld [vmem:[%s979_s0 + $0x70] sm:$0x3] }
   0xa   :  { %v410_v41 = vadd.f32 %v292_v36, %v247_v25  ;;  %v442_v42 = vadd.f32 %v408_v32, %v406_v29  ;;  %v131_v43 = vsel %vm116_vm0, %v128_v11, %v130_v33  ;;  %v244_v44 = vadd.f32 %v121_v37, %v9_v1  ;;  %v25_v36 = vld [vmem:[%s979_s0 + $0x88] sm:$0x3] }
   0xb   :  { %v246_v46 = vadd.f32 %v126_v38, %v12_v3  ;;  %v248_v47 = vadd.f32 %v131_v43, %v15_v5  ;;  %v284_v48 = vsel %vm279_vm1, %v281_v15, %v283_v34  ;;  %v289_v49 = vsel %vm279_vm1, %v286_v17, %v288_v35 }
   0xc   :  { %v474_v51 = vadd.f32 %v442_v42, %v410_v41  ;;  %v294_v52 = vsel %vm279_vm1, %v291_v28, %v293_v39  ;;  %v407_v53 = vadd.f32 %v284_v48, %v244_v44  ;;  %v132_v54 = vrot.slane %v17_v40, 1 }
   0xd   :  { %v409_v55 = vadd.f32 %v289_v49, %v246_v46  ;;  %v411_v56 = vadd.f32 %v294_v52, %v248_v47  ;;  %v133_v57 = vrot.slane %v18_v45, 1  ;;  %v295_v58 = vrot.slane %v17_v40, 2 }
   0xe   :  { %v506_v59 = vmul.f32 0.11111111, %v474_v51  ;;  %v296_v60 = vrot.slane %v18_v45, 2  ;;  %v444_v61 = vadd.f32 %v410_v41, %v408_v32  ;;  %v135_v62 = vrot.slane %v19_v50, 1 }
   0xf   :  { %v443_v0 = vadd.f32 %v409_v55, %v407_v53  ;;  %v134_v1 = vsel %vm116_vm0, %v132_v54, %v133_v57  ;;  %v298_v2 = vrot.slane %v19_v50, 2  ;;  %v445_v3 = vadd.f32 %v411_v56, %v409_v55  ;;  %v27_v50 = vld [vmem:[%s979_s0 + $0x98] sm:$0xff] }
  0x10   :  { %v538_v5 = vmin.f32 %v506_v59, 1.0  ;;  %v249_v6 = vadd.f32 %v134_v1, %v17_v40  ;;  %v297_v7 = vsel %vm279_vm1, %v295_v58, %v296_v60  ;;  %v136_v8 = vsel %vm116_vm0, %v133_v57, %v135_v62 }
  0x11   :  { %v475_v10 = vadd.f32 %v443_v0, %v411_v56  ;;  %v250_v11 = vadd.f32 %v136_v8, %v18_v45  ;;  %v299_v12 = vsel %vm279_vm1, %v296_v60, %v298_v2  ;;  %v137_v13 = vrot.slane %v20_v63, 1  ;;  %v26_v45 = vld [vmem:[%s979_s0 + $0x90] sm:$0xff] }
  0x12   :  { %571 = vst.msk [vmem:[%s980_s1] sm:$0xff] %vm570_vm2, %v538_v5  ;;  %v412_v14 = vadd.f32 %v297_v7, %v249_v6  ;;  %v138_v15 = vrot.slane %v21_v4, 1  ;;  %v300_v16 = vrot.slane %v20_v63, 2  ;;  %v301_v17 = vrot.slane %v21_v4, 2 }
  0x13   :  { %v507_v18 = vmul.f32 0.11111111, %v475_v10  ;;  %v413_v19 = vadd.f32 %v299_v12, %v250_v11  ;;  %v140_v20 = vrot.slane %v22_v9, 1  ;;  %v303_v21 = vrot.slane %v22_v9, 2 }
  0x14   :  { %v476_v22 = vadd.f32 %v444_v61, %v412_v14  ;;  %v139_v23 = vsel %vm116_vm0, %v137_v13, %v138_v15  ;;  %v302_v24 = vsel %vm279_vm1, %v300_v16, %v301_v17  ;;  %v446_v25 = vadd.f32 %v412_v14, %v410_v41  ;;  %v30_v13 = vld [vmem:[%s979_s0 + $0xb0] sm:$0xff] }
  0x15   :  { %v539_v28 = vmin.f32 %v507_v18, 1.0  ;;  %v477_v29 = vadd.f32 %v445_v3, %v413_v19  ;;  %v251_v30 = vadd.f32 %v139_v23, %v20_v63  ;;  %v141_v31 = vsel %vm116_vm0, %v138_v15, %v140_v20  ;;  %v28_v63 = vld [vmem:[%s979_s0 + $0xa0] sm:$0x3] }
  0x16   :  { %v508_v32 = vmul.f32 0.11111111, %v476_v22  ;;  %v252_v33 = vadd.f32 %v141_v31, %v21_v4  ;;  %v304_v34 = vsel %vm279_vm1, %v301_v17, %v303_v21  ;;  %v447_v35 = vadd.f32 %v413_v19, %v411_v56  ;;  %v29_v4 = vld [vmem:[%s979_s0 + $0xa8] sm:$0xff]  ;;  %v31_v22 = vld [vmem:[%s979_s0 + $0xb8] sm:$0x3] }
  0x17   :  { %572 = vst.msk [vmem:[%s980_s1 + $0x8] sm:$0xff] %vm570_vm2, %v539_v28  ;;  %v509_v37 = vmul.f32 0.11111111, %v477_v29  ;;  %v414_v38 = vadd.f32 %v302_v24, %v251_v30  ;;  %v142_v39 = vrot.slane %v23_v26, 1  ;;  %v143_v40 = vrot.slane %v24_v27, 1 }
  0x18   :  { %v540_v41 = vmin.f32 %v508_v32, 1.0  ;;  %v415_v42 = vadd.f32 %v304_v34, %v252_v33  ;;  %v305_v43 = vrot.slane %v23_v26, 2  ;;  %v306_v44 = vrot.slane %v24_v27, 2 }
  0x19   :  { %v541_v46 = vmin.f32 %v509_v37, 1.0  ;;  %v478_v47 = vadd.f32 %v446_v25, %v414_v38  ;;  %v144_v48 = vsel %vm116_vm0, %v142_v39, %v143_v40  ;;  %v448_v49 = vadd.f32 %v414_v38, %v412_v14 }
  0x1a   :  { %573 = vst.msk [vmem:[%s980_s1 + $0x10] sm:$0xff] %vm570_vm2, %v540_v41  ;;  %v479_v51 = vadd.f32 %v447_v35, %v415_v42  ;;  %v253_v52 = vadd.f32 %v144_v48, %v23_v26  ;;  %v307_v53 = vsel %vm279_vm1, %v305_v43, %v306_v44  ;;  %v145_v54 = vrot.slane %v25_v36, 1  ;;  %v32_v35 = vld [vmem:[%s979_s0 + $0xc0] sm:$0xff] }
  0x1b   :  { %574 = vst.msk [vmem:[%s980_s1 + $0x18] sm:$0xff] %vm570_vm2, %v541_v46  ;;  %v510_v55 = vmul.f32 0.11111111, %v478_v47  ;;  %v308_v56 = vrot.slane %v25_v36, 2  ;;  %v449_v57 = vadd.f32 %v415_v42, %v413_v19  ;;  %v147_v58 = vrot.slane %v26_v45, 1 }
  0x1c   :  { %v511_v59 = vmul.f32 0.11111111, %v479_v51  ;;  %v416_v60 = vadd.f32 %v307_v53, %v253_v52  ;;  %v146_v61 = vsel %vm116_vm0, %v143_v40, %v145_v54  ;;  %v148_v62 = vrot.slane %v27_v50, 1  ;;  %v33_v40 = vld [vmem:[%s979_s0 + $0xc8] sm:$0xff] }
  0x1d   :  { %v542_v0 = vmin.f32 %v510_v55, 1.0  ;;  %v254_v1 = vadd.f32 %v146_v61, %v24_v27  ;;  %v309_v2 = vsel %vm279_vm1, %v306_v44, %v308_v56  ;;  %v310_v3 = vrot.slane %v26_v45, 2 }
  0x1e   :  { %v543_v5 = vmin.f32 %v511_v59, 1.0  ;;  %v480_v6 = vadd.f32 %v448_v49, %v416_v60  ;;  %v149_v7 = vsel %vm116_vm0, %v147_v58, %v148_v62  ;;  %v311_v8 = vrot.slane %v27_v50, 2  ;;  %v34_v49 = vld [vmem:[%s979_s0 + $0xd0] sm:$0x3]  ;;  %v35_v58 = vld [vmem:[%s979_s0 + $0xd8] sm:$0xff] }
  0x1f   :  { %575 = vst.msk [vmem:[%s980_s1 + $0x20] sm:$0xff] %vm570_vm2, %v542_v0  ;;  %v417_v9 = vadd.f32 %v309_v2, %v254_v1  ;;  %v255_v10 = vadd.f32 %v149_v7, %v26_v45  ;;  %v450_v11 = vadd.f32 %v416_v60, %v414_v38  ;;  %v150_v12 = vrot.slane %v28_v63, 1 }
  0x20   :  { %576 = vst.msk [vmem:[%s980_s1 + $0x28] sm:$0xff] %vm570_vm2, %v543_v5  ;;  %v512_v14 = vmul.f32 0.11111111, %v480_v6  ;;  %v312_v15 = vsel %vm279_vm1, %v310_v3, %v311_v8  ;;  %v313_v16 = vrot.slane %v28_v63, 2  ;;  %v152_v17 = vrot.slane %v29_v4, 1  ;;  %v36_v3 = vld [vmem:[%s979_s0 + $0xe0] sm:$0xff] }
  0x21   :  { %v481_v18 = vadd.f32 %v449_v57, %v417_v9  ;;  %v418_v19 = vadd.f32 %v312_v15, %v255_v10  ;;  %v151_v20 = vsel %vm116_vm0, %v148_v62, %v150_v12  ;;  %v451_v21 = vadd.f32 %v417_v9, %v415_v42 }
  0x22   :  { %v544_v23 = vmin.f32 %v512_v14, 1.0  ;;  %v256_v24 = vadd.f32 %v151_v20, %v27_v50  ;;  %v314_v25 = vsel %vm279_vm1, %v311_v8, %v313_v16  ;;  %v153_v26 = vrot.slane %v30_v13, 1 }
  0x23   :  { %v513_v27 = vmul.f32 0.11111111, %v481_v18  ;;  %v482_v28 = vadd.f32 %v450_v11, %v418_v19  ;;  %v315_v29 = vrot.slane %v29_v4, 2  ;;  %v316_v30 = vrot.slane %v30_v13, 2 }
  0x24   :  { %577 = vst.msk [vmem:[%s980_s1 + $0x30] sm:$0xff] %vm570_vm2, %v544_v23  ;;  %v419_v31 = vadd.f32 %v314_v25, %v256_v24  ;;  %v154_v32 = vsel %vm116_vm0, %v152_v17, %v153_v26  ;;  %v452_v33 = vadd.f32 %v418_v19, %v416_v60  ;;  %v155_v34 = vrot.slane %v31_v22, 1 }
  0x25   :  { %v545_v36 = vmin.f32 %v513_v27, 1.0  ;;  %v514_v37 = vmul.f32 0.11111111, %v482_v28  ;;  %v257_v38 = vadd.f32 %v154_v32, %v29_v4  ;;  %v317_v39 = vsel %vm279_vm1, %v315_v29, %v316_v30  ;;  %v37_v4 = vld [vmem:[%s979_s0 + $0xe8] sm:$0x3] }
  0x26   :  { %v483_v41 = vadd.f32 %v451_v21, %v419_v31  ;;  %v156_v42 = vsel %vm116_vm0, %v153_v26, %v155_v34  ;;  %v318_v43 = vrot.slane %v31_v22, 2  ;;  %v453_v44 = vadd.f32 %v419_v31, %v417_v9  ;;  %v38_v21 = vld [vmem:[%s979_s0 + $0xf0] sm:$0xff]  ;;  %v39_v22 = vld [vmem:[%s979_s0 + $0xf8] sm:$0xff] }
  0x27   :  { %578 = vst.msk [vmem:[%s980_s1 + $0x38] sm:$0xff] %vm570_vm2, %v545_v36  ;;  %v546_v45 = vmin.f32 %v514_v37, 1.0  ;;  %v420_v46 = vadd.f32 %v317_v39, %v257_v38  ;;  %v258_v47 = vadd.f32 %v156_v42, %v30_v13  ;;  %v157_v48 = vrot.slane %v32_v35, 1 }
  0x28   :  { %v515_v50 = vmul.f32 0.11111111, %v483_v41  ;;  %v319_v51 = vsel %vm279_vm1, %v316_v30, %v318_v43  ;;  %v158_v52 = vrot.slane %v33_v40, 1  ;;  %v320_v53 = vrot.slane %v32_v35, 2 }
  0x29   :  { %579 = vst.msk [vmem:[%s980_s1 + $0x40] sm:$0xff] %vm570_vm2, %v546_v45  ;;  %v484_v54 = vadd.f32 %v452_v33, %v420_v46  ;;  %v421_v55 = vadd.f32 %v319_v51, %v258_v47  ;;  %v321_v56 = vrot.slane %v33_v40, 2  ;;  %v454_v57 = vadd.f32 %v420_v46, %v418_v19 }
  0x2a   :  { %v547_v59 = vmin.f32 %v515_v50, 1.0  ;;  %v159_v60 = vsel %vm116_vm0, %v157_v48, %v158_v52  ;;  %v160_v61 = vrot.slane %v34_v49, 1  ;;  %v323_v62 = vrot.slane %v34_v49, 2  ;;  %v41_v48 = vld [vmem:[%s979_s0 + $0x108] sm:$0xff]  ;;  %v42_v49 = vld [vmem:[%s979_s0 + $0x110] sm:$0xff] }
  0x2b   :  { %v516_v63 = vmul.f32 0.11111111, %v484_v54  ;;  %v485_v0 = vadd.f32 %v453_v44, %v421_v55  ;;  %v259_v1 = vadd.f32 %v159_v60, %v32_v35  ;;  %v322_v2 = vsel %vm279_vm1, %v320_v53, %v321_v56 }
  0x2c   :  { %580 = vst.msk [vmem:[%s980_s1 + $0x48] sm:$0xff] %vm570_vm2, %v547_v59  ;;  %v161_v5 = vsel %vm116_vm0, %v158_v52, %v160_v61  ;;  %v324_v6 = vsel %vm279_vm1, %v321_v56, %v323_v62  ;;  %v455_v7 = vadd.f32 %v421_v55, %v419_v31  ;;  %v162_v8 = vrot.slane %v35_v58, 1  ;;  %v40_v31 = vld [vmem:[%s979_s0 + $0x100] sm:$0x3]  ;;  %v43_v62 = vld [vmem:[%s979_s0 + $0x118] sm:$0x3] }
  0x2d   :  { %v548_v9 = vmin.f32 %v516_v63, 1.0  ;;  %v517_v10 = vmul.f32 0.11111111, %v485_v0  ;;  %v422_v11 = vadd.f32 %v322_v2, %v259_v1  ;;  %v260_v12 = vadd.f32 %v161_v5, %v33_v40 }
  0x2e   :  { %v163_v13 = vrot.slane %v36_v3, 1  ;;  %v325_v14 = vrot.slane %v35_v58, 2  ;;  %v326_v15 = vrot.slane %v36_v3, 2  ;;  %v165_v16 = vrot.slane %v37_v4, 1 }
  0x2f   :  { %581 = vst.msk [vmem:[%s980_s1 + $0x50] sm:$0xff] %vm570_vm2, %v548_v9  ;;  %v549_v17 = vmin.f32 %v517_v10, 1.0  ;;  %v486_v18 = vadd.f32 %v454_v57, %v422_v11  ;;  %v423_v19 = vadd.f32 %v324_v6, %v260_v12  ;;  %v456_v20 = vadd.f32 %v422_v11, %v420_v46  ;;  %v45_v12 = vld [vmem:[%s979_s0 + $0x128] sm:$0xff] }
  0x30   :  { %v164_v23 = vsel %vm116_vm0, %v162_v8, %v163_v13  ;;  %v327_v24 = vsel %vm279_vm1, %v325_v14, %v326_v15  ;;  %v166_v25 = vsel %vm116_vm0, %v163_v13, %v165_v16  ;;  %v328_v26 = vrot.slane %v37_v4, 2 }
  0x31   :  { %582 = vst.msk [vmem:[%s980_s1 + $0x58] sm:$0xff] %vm570_vm2, %v549_v17  ;;  %v518_v27 = vmul.f32 0.11111111, %v486_v18  ;;  %v487_v28 = vadd.f32 %v455_v7, %v423_v19  ;;  %v261_v29 = vadd.f32 %v164_v23, %v35_v58  ;;  %v262_v30 = vadd.f32 %v166_v25, %v36_v3  ;;  %v44_v3 = vld [vmem:[%s979_s0 + $0x120] sm:$0xff] }
  0x32   :  { %v329_v32 = vsel %vm279_vm1, %v326_v15, %v328_v26  ;;  %v457_v33 = vadd.f32 %v423_v19, %v421_v55  ;;  %v167_v34 = vrot.slane %v38_v21, 1  ;;  %v168_v35 = vrot.slane %v39_v22, 1  ;;  %v47_v26 = vld [vmem:[%s979_s0 + $0x138] sm:$0xff] }
  0x33   :  { %v550_v36 = vmin.f32 %v518_v27, 1.0  ;;  %v519_v37 = vmul.f32 0.11111111, %v487_v28  ;;  %v424_v38 = vadd.f32 %v327_v24, %v261_v29  ;;  %v425_v39 = vadd.f32 %v329_v32, %v262_v30 }
  0x34   :  { %v169_v40 = vsel %vm116_vm0, %v167_v34, %v168_v35  ;;  %v330_v41 = vrot.slane %v38_v21, 2  ;;  %v331_v42 = vrot.slane %v39_v22, 2  ;;  %v170_v43 = vrot.slane %v40_v31, 1 }
  0x35   :  { %583 = vst.msk [vmem:[%s980_s1 + $0x60] sm:$0xff] %vm570_vm2, %v550_v36  ;;  %v551_v44 = vmin.f32 %v519_v37, 1.0  ;;  %v488_v45 = vadd.f32 %v456_v20, %v424_v38  ;;  %v489_v46 = vadd.f32 %v457_v33, %v425_v39  ;;  %v263_v47 = vadd.f32 %v169_v40, %v38_v21  ;;  %v46_v21 = vld [vmem:[%s979_s0 + $0x130] sm:$0x3]  ;;  %v49_v40 = vld [vmem:[%s979_s0 + $0x148] sm:$0x3] }
  0x36   :  { %v332_v50 = vsel %vm279_vm1, %v330_v41, %v331_v42  ;;  %v458_v51 = vadd.f32 %v424_v38, %v422_v11  ;;  %v171_v52 = vsel %vm116_vm0, %v168_v35, %v170_v43  ;;  %v333_v53 = vrot.slane %v40_v31, 2  ;;  %v48_v35 = vld [vmem:[%s979_s0 + $0x140] sm:$0xff] }
  0x37   :  { %584 = vst.msk [vmem:[%s980_s1 + $0x68] sm:$0xff] %vm570_vm2, %v551_v44  ;;  %v520_v54 = vmul.f32 0.11111111, %v488_v45  ;;  %v521_v55 = vmul.f32 0.11111111, %v489_v46  ;;  %v426_v56 = vadd.f32 %v332_v50, %v263_v47  ;;  %v264_v57 = vadd.f32 %v171_v52, %v39_v22 }
  0x38   :  { %v334_v58 = vsel %vm279_vm1, %v331_v42, %v333_v53  ;;  %v459_v59 = vadd.f32 %v425_v39, %v423_v19  ;;  %v172_v60 = vrot.slane %v41_v48, 1  ;;  %v173_v61 = vrot.slane %v42_v49, 1 }
  0x39   :  { %v552_v63 = vmin.f32 %v520_v54, 1.0  ;;  %v553_v0 = vmin.f32 %v521_v55, 1.0  ;;  %v490_v1 = vadd.f32 %v458_v51, %v426_v56  ;;  %v427_v2 = vadd.f32 %v334_v58, %v264_v57  ;;  %v50_v57 = vld [vmem:[%s979_s0 + $0x150] sm:$0xff]  ;;  %v51_v58 = vld [vmem:[%s979_s0 + $0x158] sm:$0xff] }
  0x3a   :  { %v174_v4 = vsel %vm116_vm0, %v172_v60, %v173_v61  ;;  %v335_v5 = vrot.slane %v41_v48, 2  ;;  %v336_v6 = vrot.slane %v42_v49, 2  ;;  %v460_v7 = vadd.f32 %v426_v56, %v424_v38 }
  0x3b   :  { %585 = vst.msk [vmem:[%s980_s1 + $0x70] sm:$0xff] %vm570_vm2, %v552_v63  ;;  %v522_v8 = vmul.f32 0.11111111, %v490_v1  ;;  %v491_v9 = vadd.f32 %v459_v59, %v427_v2  ;;  %v265_v10 = vadd.f32 %v174_v4, %v41_v48  ;;  %v175_v11 = vrot.slane %v43_v62, 1 }
  0x3c   :  { %586 = vst.msk [vmem:[%s980_s1 + $0x78] sm:$0xff] %vm570_vm2, %v553_v0  ;;  %v337_v13 = vsel %vm279_vm1, %v335_v5, %v336_v6  ;;  %v338_v14 = vrot.slane %v43_v62, 2  ;;  %v461_v15 = vadd.f32 %v427_v2, %v425_v39  ;;  %v177_v16 = vrot.slane %v44_v3, 1 }
  0x3d   :  { %v554_v17 = vmin.f32 %v522_v8, 1.0  ;;  %v523_v18 = vmul.f32 0.11111111, %v491_v9  ;;  %v428_v19 = vadd.f32 %v337_v13, %v265_v10  ;;  %v176_v20 = vsel %vm116_vm0, %v173_v61, %v175_v11 }
  0x3e   :  { %v266_v22 = vadd.f32 %v176_v20, %v42_v49  ;;  %v339_v23 = vsel %vm279_vm1, %v336_v6, %v338_v14  ;;  %v178_v24 = vrot.slane %v45_v12, 1  ;;  %v340_v25 = vrot.slane %v44_v3, 2 }
  0x3f   :  { %587 = vst.msk [vmem:[%s980_s1 + $0x80] sm:$0xff] %vm570_vm2, %v554_v17  ;;  %v555_v27 = vmin.f32 %v523_v18, 1.0  ;;  %v492_v28 = vadd.f32 %v460_v7, %v428_v19  ;;  %v341_v29 = vrot.slane %v45_v12, 2  ;;  %v462_v30 = vadd.f32 %v428_v19, %v426_v56  ;;  %v52_v7 = vld [vmem:[%s979_s0 + $0x160] sm:$0x3] }
  0x40   :  { %v429_v31 = vadd.f32 %v339_v23, %v266_v22  ;;  %v179_v32 = vsel %vm116_vm0, %v177_v16, %v178_v24  ;;  %v180_v33 = vrot.slane %v46_v21, 1  ;;  %v343_v34 = vrot.slane %v46_v21, 2  ;;  %v53_v16 = vld [vmem:[%s979_s0 + $0x168] sm:$0xff] }
  0x41   :  { %588 = vst.msk [vmem:[%s980_s1 + $0x88] sm:$0xff] %vm570_vm2, %v555_v27  ;;  %v524_v36 = vmul.f32 0.11111111, %v492_v28  ;;  %v267_v37 = vadd.f32 %v179_v32, %v44_v3  ;;  %v342_v38 = vsel %vm279_vm1, %v340_v25, %v341_v29  ;;  %v182_v39 = vrot.slane %v47_v26, 1  ;;  %v54_v25 = vld [vmem:[%s979_s0 + $0x170] sm:$0xff] }
  0x42   :  { %v493_v41 = vadd.f32 %v461_v15, %v429_v31  ;;  %v181_v42 = vsel %vm116_vm0, %v178_v24, %v180_v33  ;;  %v344_v43 = vsel %vm279_vm1, %v341_v29, %v343_v34  ;;  %v463_v44 = vadd.f32 %v429_v31, %v427_v2 }
  0x43   :  { %v556_v45 = vmin.f32 %v524_v36, 1.0  ;;  %v430_v46 = vadd.f32 %v342_v38, %v267_v37  ;;  %v268_v47 = vadd.f32 %v181_v42, %v45_v12  ;;  %v183_v48 = vrot.slane %v48_v35, 1 }
  0x44   :  { %v525_v49 = vmul.f32 0.11111111, %v493_v41  ;;  %v345_v50 = vrot.slane %v47_v26, 2  ;;  %v346_v51 = vrot.slane %v48_v35, 2  ;;  %v185_v52 = vrot.slane %v49_v40, 1 }
  0x45   :  { %589 = vst.msk [vmem:[%s980_s1 + $0x90] sm:$0xff] %vm570_vm2, %v556_v45  ;;  %v494_v53 = vadd.f32 %v462_v30, %v430_v46  ;;  %v431_v54 = vadd.f32 %v344_v43, %v268_v47  ;;  %v184_v55 = vsel %vm116_vm0, %v182_v39, %v183_v48  ;;  %v464_v56 = vadd.f32 %v430_v46, %v428_v19  ;;  %v55_v30 = vld [vmem:[%s979_s0 + $0x178] sm:$0x3]  ;;  %v56_v43 = vld [vmem:[%s979_s0 + $0x180] sm:$0xff] }
  0x46   :  { %v557_v59 = vmin.f32 %v525_v49, 1.0  ;;  %v269_v60 = vadd.f32 %v184_v55, %v47_v26  ;;  %v347_v61 = vsel %vm279_vm1, %v345_v50, %v346_v51  ;;  %v186_v62 = vsel %vm116_vm0, %v183_v48, %v185_v52  ;;  %v57_v48 = vld [vmem:[%s979_s0 + $0x188] sm:$0xff] }
  0x47   :  { %v526_v63 = vmul.f32 0.11111111, %v494_v53  ;;  %v495_v0 = vadd.f32 %v463_v44, %v431_v54  ;;  %v270_v1 = vadd.f32 %v186_v62, %v48_v35  ;;  %v348_v2 = vrot.slane %v49_v40, 2  ;;  %v58_v53 = vld [vmem:[%s979_s0 + $0x190] sm:$0x3] }
  0x48   :  { %590 = vst.msk [vmem:[%s980_s1 + $0x98] sm:$0xff] %vm570_vm2, %v557_v59  ;;  %v432_v3 = vadd.f32 %v347_v61, %v269_v60  ;;  %v465_v4 = vadd.f32 %v431_v54, %v429_v31  ;;  %v187_v5 = vrot.slane %v50_v57, 1  ;;  %v188_v6 = vrot.slane %v51_v58, 1 }
  0x49   :  { %v558_v8 = vmin.f32 %v526_v63, 1.0  ;;  %v527_v9 = vmul.f32 0.11111111, %v495_v0  ;;  %v349_v10 = vsel %vm279_vm1, %v346_v51, %v348_v2  ;;  %v350_v11 = vrot.slane %v50_v57, 2 }
  0x4a   :  { %v496_v12 = vadd.f32 %v464_v56, %v432_v3  ;;  %v433_v13 = vadd.f32 %v349_v10, %v270_v1  ;;  %v189_v14 = vsel %vm116_vm0, %v187_v5, %v188_v6  ;;  %v351_v15 = vrot.slane %v51_v58, 2 }
  0x4b   :  { %591 = vst.msk [vmem:[%s980_s1 + $0xa0] sm:$0xff] %vm570_vm2, %v558_v8  ;;  %v559_v17 = vmin.f32 %v527_v9, 1.0  ;;  %v271_v18 = vadd.f32 %v189_v14, %v50_v57  ;;  %v466_v19 = vadd.f32 %v432_v3, %v430_v46  ;;  %v190_v20 = vrot.slane %v52_v7, 1 }
  0x4c   :  { %v528_v21 = vmul.f32 0.11111111, %v496_v12  ;;  %v497_v22 = vadd.f32 %v465_v4, %v433_v13  ;;  %v352_v23 = vsel %vm279_vm1, %v350_v11, %v351_v15  ;;  %v353_v24 = vrot.slane %v52_v7, 2  ;;  %v60_v7 = vld [vmem:[%s979_s0 + $0x1a0] sm:$0xff] }
  0x4d   :  { %592 = vst.msk [vmem:[%s980_s1 + $0xa8] sm:$0xff] %vm570_vm2, %v559_v17  ;;  %v434_v26 = vadd.f32 %v352_v23, %v271_v18  ;;  %v191_v27 = vsel %vm116_vm0, %v188_v6, %v190_v20  ;;  %v467_v28 = vadd.f32 %v433_v13, %v431_v54  ;;  %v192_v29 = vrot.slane %v53_v16, 1  ;;  %v59_v6 = vld [vmem:[%s979_s0 + $0x198] sm:$0xff]  ;;  %v61_v20 = vld [vmem:[%s979_s0 + $0x1a8] sm:$0x3] }
  0x4e   :  { %v560_v31 = vmin.f32 %v528_v21, 1.0  ;;  %v529_v32 = vmul.f32 0.11111111, %v497_v22  ;;  %v272_v33 = vadd.f32 %v191_v27, %v51_v58  ;;  %v354_v34 = vsel %vm279_vm1, %v351_v15, %v353_v24 }
  0x4f   :  { %v498_v35 = vadd.f32 %v466_v19, %v434_v26  ;;  %v193_v36 = vrot.slane %v54_v25, 1  ;;  %v355_v37 = vrot.slane %v53_v16, 2  ;;  %v356_v38 = vrot.slane %v54_v25, 2 }
  0x50   :  { %593 = vst.msk [vmem:[%s980_s1 + $0xb0] sm:$0xff] %vm570_vm2, %v560_v31  ;;  %v561_v39 = vmin.f32 %v529_v32, 1.0  ;;  %v435_v40 = vadd.f32 %v354_v34, %v272_v33  ;;  %v468_v41 = vadd.f32 %v434_v26, %v432_v3  ;;  %v195_v42 = vrot.slane %v55_v30, 1 }
  0x51   :  { %v530_v44 = vmul.f32 0.11111111, %v498_v35  ;;  %v194_v45 = vsel %vm116_vm0, %v192_v29, %v193_v36  ;;  %v357_v46 = vsel %vm279_vm1, %v355_v37, %v356_v38  ;;  %v358_v47 = vrot.slane %v55_v30, 2 }
  0x52   :  { %594 = vst.msk [vmem:[%s980_s1 + $0xb8] sm:$0xff] %vm570_vm2, %v561_v39  ;;  %v499_v49 = vadd.f32 %v467_v28, %v435_v40  ;;  %v273_v50 = vadd.f32 %v194_v45, %v53_v16  ;;  %v196_v51 = vsel %vm116_vm0, %v193_v36, %v195_v42  ;;  %v469_v52 = vadd.f32 %v435_v40, %v433_v13 }
  0x53   :  { %v562_v54 = vmin.f32 %v530_v44, 1.0  ;;  %v274_v55 = vadd.f32 %v196_v51, %v54_v25  ;;  %v359_v56 = vsel %vm279_vm1, %v356_v38, %v358_v47  ;;  %v197_v57 = vrot.slane %v56_v43, 1 }
  0x54   :  { %v531_v58 = vmul.f32 0.11111111, %v499_v49  ;;  %v436_v59 = vadd.f32 %v357_v46, %v273_v50  ;;  %v198_v60 = vrot.slane %v57_v48, 1  ;;  %v360_v61 = vrot.slane %v56_v43, 2 }
  0x55   :  { %595 = vst.msk [vmem:[%s980_s1 + $0xc0] sm:$0xff] %vm570_vm2, %v562_v54  ;;  %v437_v62 = vadd.f32 %v359_v56, %v274_v55  ;;  %v361_v63 = vrot.slane %v57_v48, 2  ;;  %v200_v0 = vrot.slane %v58_v53, 1  ;;  %v363_v1 = vrot.slane %v58_v53, 2 }
  0x56   :  { %v563_v2 = vmin.f32 %v531_v58, 1.0  ;;  %v500_v3 = vadd.f32 %v468_v41, %v436_v59  ;;  %v199_v4 = vsel %vm116_vm0, %v197_v57, %v198_v60  ;;  %v470_v5 = vadd.f32 %v436_v59, %v434_v26 }
  0x57   :  { %v501_v8 = vadd.f32 %v469_v52, %v437_v62  ;;  %v275_v9 = vadd.f32 %v199_v4, %v56_v43  ;;  %v362_v10 = vsel %vm279_vm1, %v360_v61, %v361_v63  ;;  %v201_v11 = vsel %vm116_vm0, %v198_v60, %v200_v0 }
  0x58   :  { %596 = vst.msk [vmem:[%s980_s1 + $0xc8] sm:$0xff] %vm570_vm2, %v563_v2  ;;  %v532_v12 = vmul.f32 0.11111111, %v500_v3  ;;  %v276_v13 = vadd.f32 %v201_v11, %v57_v48  ;;  %v364_v14 = vsel %vm279_vm1, %v361_v63, %v363_v1  ;;  %v471_v15 = vadd.f32 %v437_v62, %v435_v40 }
  0x59   :  { %v533_v16 = vmul.f32 0.11111111, %v501_v8  ;;  %v438_v17 = vadd.f32 %v362_v10, %v275_v9  ;;  %v202_v18 = vrot.slane %v59_v6, 1  ;;  %v203_v19 = vrot.slane %v60_v7, 1 }
  0x5a   :  { %v564_v21 = vmin.f32 %v532_v12, 1.0  ;;  %v439_v22 = vadd.f32 %v364_v14, %v276_v13  ;;  %v365_v23 = vrot.slane %v59_v6, 2  ;;  %v366_v24 = vrot.slane %v60_v7, 2 }
  0x5b   :  { %v565_v25 = vmin.f32 %v533_v16, 1.0  ;;  %v502_v26 = vadd.f32 %v470_v5, %v438_v17  ;;  %v204_v27 = vsel %vm116_vm0, %v202_v18, %v203_v19  ;;  %v472_v28 = vadd.f32 %v438_v17, %v436_v59 }
  0x5c   :  { %597 = vst.msk [vmem:[%s980_s1 + $0xd0] sm:$0xff] %vm570_vm2, %v564_v21  ;;  %v503_v29 = vadd.f32 %v471_v15, %v439_v22  ;;  %v277_v30 = vadd.f32 %v204_v27, %v59_v6  ;;  %v367_v31 = vsel %vm279_vm1, %v365_v23, %v366_v24  ;;  %v205_v32 = vrot.slane %v61_v20, 1 }
  0x5d   :  { %598 = vst.msk [vmem:[%s980_s1 + $0xd8] sm:$0xff] %vm570_vm2, %v565_v25  ;;  %v534_v33 = vmul.f32 0.11111111, %v502_v26  ;;  %v368_v34 = vrot.slane %v61_v20, 2  ;;  %v473_v41 = vadd.f32 %v439_v22, %v437_v62 }
  0x5e   :  { %v535_v35 = vmul.f32 0.11111111, %v503_v29  ;;  %v440_v36 = vadd.f32 %v367_v31, %v277_v30  ;;  %v206_v37 = vsel %vm116_vm0, %v203_v19, %v205_v32 }
  0x5f   :  { %v566_v38 = vmin.f32 %v534_v33, 1.0  ;;  %v278_v39 = vadd.f32 %v206_v37, %v60_v7  ;;  %v369_v40 = vsel %vm279_vm1, %v366_v24, %v368_v34 }
  0x60   :  { %v567_v42 = vmin.f32 %v535_v35, 1.0  ;;  %v504_v43 = vadd.f32 %v472_v28, %v440_v36 }
  0x61   :  { %599 = vst.msk [vmem:[%s980_s1 + $0xe0] sm:$0xff] %vm570_vm2, %v566_v38  ;;  %v441_v44 = vadd.f32 %v369_v40, %v278_v39 }
  0x62   :  { %600 = vst.msk [vmem:[%s980_s1 + $0xe8] sm:$0xff] %vm570_vm2, %v567_v42  ;;  %v536_v45 = vmul.f32 0.11111111, %v504_v43 }
  0x63   :  { %v505_v46 = vadd.f32 %v473_v41, %v441_v44 }
  0x64   :  { %v568_v47 = vmin.f32 %v536_v45, 1.0 }
  0x65   :  { %v537_v48 = vmul.f32 0.11111111, %v505_v46 }
  0x66   :  { %601 = vst.msk [vmem:[%s980_s1 + $0xf0] sm:$0xff] %vm570_vm2, %v568_v47 }
  0x67   :  { %v569_v49 = vmin.f32 %v537_v48, 1.0 }
  0x69   :  { %602 = vst.msk [vmem:[%s980_s1 + $0xf8] sm:$0xff] %vm570_vm2, %v569_v49 }

</bundles_post_ra>
